<compile_context>
chip_gen: v7x
topology: tpu7x:2x2x1
jax: 0.10.0
libtpu: 0.0.40
codegen_flags: <defaults>
</compile_context>

<pallas_src>
import jax
import jax.numpy as jnp
from jax.experimental import pallas as pl
from jax.experimental.pallas import tpu as pltpu


def _prior_fp_kernel(y_ref, wt_ref, b_ref, out_ref):
    # y_ref:   (B, C)   VMEM
    # wt_ref:  (C, Z)   VMEM  (pre-transposed Linear weight)
    # b_ref:   (1, Z)   VMEM
    # out_ref: (B, Z)   VMEM  (lane-dense, Z = 128 -> unmasked full-lane store)
    y = y_ref[...]
    B, C = y.shape
    Z = out_ref.shape[-1]

    if C <= 8:
        # K is tiny: C broadcast-FMAs on the VPU beat MXU push / FIFO-pop
        # latency for an (8 x 4 x 128) problem.  Static Python unroll (C is a
        # compile-time constant).  All math in f32 (v5e-friendly epilogue).
        acc = jnp.broadcast_to(b_ref[...], (B, Z)).astype(jnp.float32)
        for c in range(C):
            acc = acc + (y[:, c:c + 1].astype(jnp.float32)
                         * wt_ref[c:c + 1, :].astype(jnp.float32))
    else:
        # General path: MXU matmul with f32 accumulation.
        acc = jnp.dot(y, wt_ref[...], preferred_element_type=jnp.float32)
        acc = acc + b_ref[...]

    out_ref[...] = acc.astype(out_ref.dtype)


def init_prior_fp_params(weight, bias):
    """Hoisted, done ONCE: PyTorch-layout W (Z, C), b (Z,) -> kernel layout."""
    Z, C = weight.shape
    assert Z % 2 == 0, "z_dim must be even for the mu/logvar split"
    wt = jnp.asarray(weight).T.copy()           # (C, Z)
    b2d = jnp.asarray(bias).reshape(1, Z)       # (1, Z)
    return wt, b2d


def prior_fp_forward(y, wt, b2d):
    """y: (B, C) f32; wt: (C, Z); b2d: (1, Z). Returns (mu, logvar), each (B, Z//2)."""
    B, C = y.shape
    Cw, Z = wt.shape
    assert Cw == C
    half = Z // 2

    out = pl.pallas_call(
        _prior_fp_kernel,
        out_shape=jax.ShapeDtypeStruct((B, Z), y.dtype),
        # No grid: single kernel invocation, whole (tiny) arrays live in VMEM.
        in_specs=[
            pl.BlockSpec(memory_space=pltpu.MemorySpace.VMEM),
            pl.BlockSpec(memory_space=pltpu.MemorySpace.VMEM),
            pl.BlockSpec(memory_space=pltpu.MemorySpace.VMEM),
        ],
        out_specs=pl.BlockSpec(memory_space=pltpu.MemorySpace.VMEM),
        cost_estimate=pl.CostEstimate(
            flops=2 * B * C * Z,
            transcendentals=0,
            bytes_accessed=4 * (B * C + C * Z + Z + B * Z),
        ),
    )(y, wt, b2d)

    # Static slices outside the kernel: XLA fuses these into the consumers of
    # mu / logvar, so no extra HBM round-trip and no masked stores in-kernel.
    mu = out[:, :half]
    logvar = out[:, half:]
    return mu, logvar


if __name__ == "__main__":
    num_classes = 4
    z_dim = 128
    batch = 8

    key = jax.random.PRNGKey(0)
    k_w, k_b, k_y = jax.random.split(key, 3)

    # Deterministic "Linear" parameters (PyTorch shapes: W (z_dim, C), b (z_dim,))
    bound = 1.0 / (num_classes ** 0.5)
    weight = jax.random.uniform(k_w, (z_dim, num_classes), jnp.float32,
                                minval=-bound, maxval=bound)
    bias = jax.random.uniform(k_b, (z_dim,), jnp.float32,
                              minval=-bound, maxval=bound)

    # Example input: class scores (B, num_classes)
    y = jax.random.normal(k_y, (batch, num_classes), jnp.float32)

    # Parameter layout prep happens once, outside the hot forward path.
    wt, b2d = init_prior_fp_params(weight, bias)

    mu, logvar = prior_fp_forward(y, wt, b2d)
    jax.block_until_ready((mu, logvar))

    # Reference check against plain JAX
    ref = y @ weight.T + bias
    ref_mu, ref_logvar = ref[:, : z_dim // 2], ref[:, z_dim // 2:]
    assert mu.shape == (batch, z_dim // 2)
    assert logvar.shape == (batch, z_dim // 2)
    assert jnp.allclose(mu, ref_mu, atol=1e-5)
    assert jnp.allclose(logvar, ref_logvar, atol=1e-5)

    print("KERNEL_OK")
</pallas_src>

<mosaic_0001>
module attributes {stable_mosaic.version = 11 : i64} {
  func.func @_prior_fp_kernel(%arg0: memref<8x4xf32, #tpu.memory_space<vmem>>, %arg1: memref<4x128xf32, #tpu.memory_space<vmem>>, %arg2: memref<1x128xf32, #tpu.memory_space<vmem>>, %arg3: memref<8x128xf32, #tpu.memory_space<vmem>>) attributes {dimension_semantics = [], scalar_prefetch = 0 : i64, scratch_operands = 0 : i64, tpu.core_type = #tpu.core_type<tc>} {
    %c0 = arith.constant 0 : index
    %c0_0 = arith.constant 0 : index
    %0 = vector.load %arg0[%c0, %c0_0] : memref<8x4xf32, #tpu.memory_space<vmem>>, vector<8x4xf32>
    %c0_1 = arith.constant 0 : index
    %c0_2 = arith.constant 0 : index
    %1 = vector.load %arg2[%c0_1, %c0_2] : memref<1x128xf32, #tpu.memory_space<vmem>>, vector<1x128xf32>
    %2 = vector.shape_cast %1 : vector<1x128xf32> to vector<1x128xf32>
    %3 = vector.broadcast %2 : vector<1x128xf32> to vector<8x128xf32>
    %4 = vector.extract_strided_slice %0 {offsets = [0, 0], sizes = [8, 1], strides = [1, 1]} : vector<8x4xf32> to vector<8x1xf32>
    %c0_3 = arith.constant 0 : index
    %c0_4 = arith.constant 0 : index
    %5 = vector.load %arg1[%c0_3, %c0_4] : memref<4x128xf32, #tpu.memory_space<vmem>>, vector<1x128xf32>
    %6 = vector.broadcast %4 : vector<8x1xf32> to vector<8x128xf32>
    %7 = vector.broadcast %5 : vector<1x128xf32> to vector<8x128xf32>
    %8 = arith.mulf %6, %7 : vector<8x128xf32>
    %9 = arith.addf %3, %8 : vector<8x128xf32>
    %10 = vector.extract_strided_slice %0 {offsets = [0, 1], sizes = [8, 1], strides = [1, 1]} : vector<8x4xf32> to vector<8x1xf32>
    %c1 = arith.constant 1 : index
    %c0_5 = arith.constant 0 : index
    %11 = vector.load %arg1[%c1, %c0_5] : memref<4x128xf32, #tpu.memory_space<vmem>>, vector<1x128xf32>
    %12 = vector.broadcast %10 : vector<8x1xf32> to vector<8x128xf32>
    %13 = vector.broadcast %11 : vector<1x128xf32> to vector<8x128xf32>
    %14 = arith.mulf %12, %13 : vector<8x128xf32>
    %15 = arith.addf %9, %14 : vector<8x128xf32>
    %16 = vector.extract_strided_slice %0 {offsets = [0, 2], sizes = [8, 1], strides = [1, 1]} : vector<8x4xf32> to vector<8x1xf32>
    %c2 = arith.constant 2 : index
    %c0_6 = arith.constant 0 : index
    %17 = vector.load %arg1[%c2, %c0_6] : memref<4x128xf32, #tpu.memory_space<vmem>>, vector<1x128xf32>
    %18 = vector.broadcast %16 : vector<8x1xf32> to vector<8x128xf32>
    %19 = vector.broadcast %17 : vector<1x128xf32> to vector<8x128xf32>
    %20 = arith.mulf %18, %19 : vector<8x128xf32>
    %21 = arith.addf %15, %20 : vector<8x128xf32>
    %22 = vector.extract_strided_slice %0 {offsets = [0, 3], sizes = [8, 1], strides = [1, 1]} : vector<8x4xf32> to vector<8x1xf32>
    %c3 = arith.constant 3 : index
    %c0_7 = arith.constant 0 : index
    %23 = vector.load %arg1[%c3, %c0_7] : memref<4x128xf32, #tpu.memory_space<vmem>>, vector<1x128xf32>
    %24 = vector.broadcast %22 : vector<8x1xf32> to vector<8x128xf32>
    %25 = vector.broadcast %23 : vector<1x128xf32> to vector<8x128xf32>
    %26 = arith.mulf %24, %25 : vector<8x128xf32>
    %27 = arith.addf %21, %26 : vector<8x128xf32>
    %c0_8 = arith.constant 0 : index
    %c0_9 = arith.constant 0 : index
    %28 = vector.load %arg3[%c0_8, %c0_9] : memref<8x128xf32, #tpu.memory_space<vmem>>, vector<8x128xf32>
    tpu.vector_store %arg3[%c0_8, %c0_9], %27 {strides = array<i32>} : memref<8x128xf32, #tpu.memory_space<vmem>>, vector<8x128xf32>,
    return
  }
}

</mosaic_0001>

<bundles_post_ra>
// kernel: tpu_custom_call.1
= control target key start
LH: loop header
LB: loop body
LE: loop exit
PB: predicated region body
PF: predicated region fallthrough
CT: control target
= control target key end

     0   :  { %v122_v1 = vmov 0   ;;  %v123_v2 = vmov 2   ;;  %s177_s0 = inlined_call_operand.vmem [shape: f32[8,4], index: 0, kind: input, shape index: {}]   ;;  %s178_s1 = inlined_call_operand.vmem [shape: f32[4,128], index: 1, kind: input, shape index: {}]   ;;  %s179_s2 = inlined_call_operand.vmem [shape: f32[1,128], index: 2, kind: input, shape index: {}]   ;;  %s180_s3 = inlined_call_operand.hbm [shape: f32[8,128], index: 3, kind: output, shape index: {}]  }
   0x1   :  { %v15_v0 = vld [vmem:[%s177_s0] sm:$0xff]  ;;  %93 = vset.pattern.permute.xlu0 %v122_v1  ;;  %95 = vset.pattern.permute.xlu1 %v123_v2 }
   0x2   :  { %8 = vsyncpa [#allocation3], 0  ;;  %26 = vperm.xlu0 %93, %v15_v0   ;;  %48 = vperm.xlu1 %95, %v15_v0   ;;  %v124_v3 = vmov 1   ;;  %v125_v4 = vmov 3   ;;  %v84_v5 = vld [vmem:[%s178_s1] ss:$0 sm:$0xff] }
   0x3   :  { %v83_v9 = vld [vmem:[%s179_s2] ss:$0 sm:$0xff]  ;;  %v85_v10 = vld [vmem:[%s178_s1 + $0x1] ss:$0 sm:$0xff]  ;;  %v86_v11 = vld [vmem:[%s178_s1 + $0x2] ss:$0 sm:$0xff] }
   0x4   :  { %v87_v13 = vld [vmem:[%s178_s1 + $0x3] ss:$0 sm:$0xff]  ;;  %s126_s2 = smov [#allocation2]  }
   0x5   :  { %s75_s23 = sshll.u32 %s126_s2, 4  ;;  %s76_s23 = int_to_ptr.vmem [resolvable:$true] %s75_s23 }
   0x6   :  { %94 = vset.pattern.permute.xlu0 %v124_v3  ;;  %96 = vset.pattern.permute.xlu1 %v125_v4  ;;  %s98_s24 = scalar_lea.vmem %s76_s23, 128  ;;  %p103_p1 = scmp.lt.s32.totalorder %s76_s23, %s76_s23 }
   0x7   :  { %37 = vperm.xlu0 %94, %v15_v0   ;;  %59 = vperm.xlu1 %96, %v15_v0   ;;  %p99_p0 = scmp.ne.s32.totalorder %s76_s23, %s98_s24  ;;  %p104_p2 = scmp.lt.s32.totalorder %s98_s24, %s98_s24 }
   0x9   :  { %p105_p3 = por %p104_p2, %p103_p1 }
   0xb   :  { %97 = vset.pattern.permute.xlu0 %v125_v4  ;;  %p106_p4 = pnand %p105_p3, %p99_p0 }
  0x81   :  { %v27_v6 = vpop.permute.xlu0 %26  ;;  %v49_v7 = vpop.permute.xlu1 %48 }
  0x82   :  { %v33_v8 = vmul.f32 %v84_v5, %v27_v6  ;;  %v55_v17 = vmul.f32 %v86_v11, %v49_v7 }
  0x84   :  { %v34_v15 = vadd.f32 %v83_v9, %v33_v8 }
  0x86   :  { %v38_v12 = vpop.permute.xlu0 %37  ;;  %v60_v14 = vpop.permute.xlu1 %59 }
  0x87   :  { %v44_v16 = vmul.f32 %v85_v10, %v38_v12  ;;  %v66_v19 = vmul.f32 %v87_v13, %v60_v14 }
  0x89   :  { %v45_v18 = vadd.f32 %v44_v16, %v34_v15 }
  0x8b   :  { %v56_v20 = vadd.f32 %v55_v17, %v45_v18 }
  0x8d   :  { %v67_v21 = vadd.f32 %v66_v19, %v56_v20 }
  0x8f   :  { %68 = vst [vmem:[#allocation2] sm:$0xff] %v67_v21 }
  0x90   :  { %109 = shalt.err (!%p106_p4)
}
  0x91   :  { %s110_s26 = scalar_lea.hbm %s180_s3, 128 }
  0x92   :  { %p111_p5 = scmp.ne.s32.totalorder %s180_s3, %s110_s26  ;;  %p114_p6 = scmp.lt.u32.totalorder %s110_s26, %s180_s3 }
  0x94   :  { %p116_p7 = pnand %p114_p6, %p111_p5 }
  0x96   :  { %119 = shalt.err (!%p116_p7)
}
  0x97   :  { %78 = dma.vmem_to_hbm [thread:$0]  %s76_s23, 128, %s180_s3, [#allocation3]  }
  0x98   :  { %120 = dma.done.wait [#allocation3], 128  }
  0x99   :  { %121 = vsyncadd [#allocation3], 4294967168 }
  0x9a   :  { %82 = vsyncpa [#allocation3], 1 }

</bundles_post_ra>
